<compile_context>
chip_gen: v5e
topology: v5e:2x2
jax: 0.10.0
libtpu: 0.0.40
codegen_flags: <defaults>
</compile_context>

<pallas_src>
import functools

import jax
import jax.numpy as jnp
from jax.experimental import pallas as pl
from jax.experimental.pallas import tpu as pltpu

IGNORE_LABEL = 255
NUM_CLASSES = 19
LANES = 128
MAX_ROWS_PER_TILE = 512  # 512 rows * 128 lanes = 65536 pixels per grid step

# Deterministic class weights (the module's typical Cityscapes instantiation).
CLASS_WEIGHTS = jnp.array(
    [0.8373, 0.918, 0.866, 1.0345, 1.0166, 0.9969, 0.9754, 1.0489, 0.8786,
     1.0023, 0.9539, 0.9843, 1.1116, 0.9037, 1.0865, 1.0955, 1.0865, 1.1529,
     1.0507], dtype=jnp.float32)


def _ce_kernel(pred_ref, tgt_ref, w_ref, loss_ref, wsum_ref, *,
               num_classes, rows_total, rows_tile, mask_tail):
    """One (batch, pixel-tile) grid step.

    pred_ref : (1, C, R, 128) logits block. Pixels live on sublane x lane,
               classes are leading planes -> class reductions are pure VALU.
    tgt_ref  : (1, R, 128) int32 labels.
    w_ref    : (C,) float32 class weights in SMEM.
    loss_ref / wsum_ref : (1, 1, 1, 128) lane-dense per-tile partial sums.
    """
    tgt = tgt_ref[0]  # (R, 128) int32

    # Pass 1: running max over class planes (plane-wise VALU, no XLU).
    m = pred_ref[0, 0].astype(jnp.float32)
    for c in range(1, num_classes):
        m = jnp.maximum(m, pred_ref[0, c].astype(jnp.float32))

    # Pass 2: exp-sum, target (shifted) logit and target weight; the one-hot
    # mask is built once per class and shared, and `shifted` is reused for
    # both the exp and the target-logit select.
    sumexp = jnp.zeros_like(m)
    shifted_t = jnp.zeros_like(m)
    w_t = jnp.zeros_like(m)
    for c in range(num_classes):
        sh = pred_ref[0, c].astype(jnp.float32) - m
        sumexp = sumexp + jnp.exp(sh)
        hit = tgt == c                       # ignore_index=255 never matches
        shifted_t = jnp.where(hit, sh, shifted_t)
        w_t = jnp.where(hit, w_ref[c], w_t)  # SMEM scalar broadcast

    valid = tgt != IGNORE_LABEL
    if mask_tail:
        # Only emitted when the last tile is partial (garbage rows from the
        # clamped DMA): mask on the global row index.
        row = (pl.program_id(1) * rows_tile
               + jax.lax.broadcasted_iota(jnp.int32, tgt.shape, 0))
        valid = valid & (row < rows_total)

    # nll = lse - logit_t = log(sum exp(shifted)) - shifted_t  (max cancels).
    nll = jnp.log(sumexp) - shifted_t

    # True selects (NOT multiply-by-mask) so NaN/Inf from tail garbage never
    # propagates into the sums.
    loss_pix = jnp.where(valid, w_t * nll, 0.0)
    wsum_pix = jnp.where(valid, w_t, 0.0)

    # Fold the sublane axis to a single lane-dense (1, 128) row per tile so
    # every grid cell owns its own output block (both grid axes parallel).
    loss_ref[0, 0] = jnp.sum(loss_pix, axis=0, keepdims=True)
    wsum_ref[0, 0] = jnp.sum(wsum_pix, axis=0, keepdims=True)


@functools.partial(jax.jit, static_argnames=("max_rows",))
def cross_entropy_loss(pred, target, weight=None, max_rows=MAX_ROWS_PER_TILE):
    """pred: (N, C, H, W) logits (f32 or bf16); target: (N, H, W) int labels.

    Returns scalar float32: weighted mean CE with ignore_index=255, matching
    torch.nn.CrossEntropyLoss(weight=weight, ignore_index=255,
    reduction='mean').  Note: if every pixel is ignored the result is 0/0
    (NaN), matching torch.
    """
    N, C, H, W = pred.shape
    HW = H * W
    if weight is None:
        weight = jnp.ones((C,), jnp.float32)
    weight = weight.astype(jnp.float32).reshape(C)

    logits = pred.reshape(N, C, HW)          # free reshape, no upcast
    labels = target.reshape(N, HW)
    if labels.dtype != jnp.int32:
        labels = labels.astype(jnp.int32)

    # Pad the flat pixel axis up to a multiple of 128 lanes if needed; padded
    # labels are IGNORE_LABEL so they drop out of both sums.
    hw_pad = ((HW + LANES - 1) // LANES) * LANES
    if hw_pad != HW:
        # TODO(synk): rare path (H*W not a multiple of 128) pays one pad copy.
        logits = jnp.pad(logits, ((0, 0), (0, 0), (0, hw_pad - HW)))
        labels = jnp.pad(labels, ((0, 0), (0, hw_pad - HW)),
                         constant_values=IGNORE_LABEL)

    rows_total = hw_pad // LANES
    # Free reshapes (minor-dim split): class-major planes of (rows, 128).
    logits = logits.reshape(N, C, rows_total, LANES)
    labels = labels.reshape(N, rows_total, LANES)

    rows_tile = rows_total if rows_total <= max_rows else max_rows
    num_tiles = pl.cdiv(rows_total, rows_tile)
    mask_tail = (rows_total % rows_tile) != 0

    kernel = functools.partial(
        _ce_kernel, num_classes=C, rows_total=rows_total,
        rows_tile=rows_tile, mask_tail=mask_tail)

    loss_part, wsum_part = pl.pallas_call(
        kernel,
        out_shape=(jax.ShapeDtypeStruct((N, num_tiles, 1, LANES), jnp.float32),
                   jax.ShapeDtypeStruct((N, num_tiles, 1, LANES), jnp.float32)),
        grid_spec=pltpu.PrefetchScalarGridSpec(
            num_scalar_prefetch=0,
            grid=(N, num_tiles),
            in_specs=[
                pl.BlockSpec((1, C, rows_tile, LANES),
                             lambda n, t: (n, 0, t, 0)),          # logits
                pl.BlockSpec((1, rows_tile, LANES),
                             lambda n, t: (n, t, 0)),             # labels
                pl.BlockSpec(memory_space=pltpu.MemorySpace.SMEM),  # weights
            ],
            out_specs=[
                pl.BlockSpec((1, 1, 1, LANES), lambda n, t: (n, t, 0, 0)),
                pl.BlockSpec((1, 1, 1, LANES), lambda n, t: (n, t, 0, 0)),
            ],
        ),
        compiler_params=pltpu.CompilerParams(
            dimension_semantics=("parallel", "parallel"),
            vmem_limit_bytes=48 * 1024 * 1024),
    )(logits, labels, weight)

    # torch 'mean' reduction with weights: sum(w_t * nll) / sum(w_t).
    return jnp.sum(loss_part) / jnp.sum(wsum_part)


def _reference(pred, target, weight):
    """Pure-JAX reference for correctness checking."""
    N, C, H, W = pred.shape
    logits = jnp.transpose(pred, (0, 2, 3, 1)).reshape(-1, C).astype(jnp.float32)
    labels = target.reshape(-1).astype(jnp.int32)
    valid = labels != IGNORE_LABEL
    safe = jnp.where(valid, labels, 0)
    logp = jax.nn.log_softmax(logits, axis=-1)
    nll = -jnp.take_along_axis(logp, safe[:, None], axis=1)[:, 0]
    w = weight[safe]
    vf = valid.astype(jnp.float32)
    return jnp.sum(vf * w * nll) / jnp.sum(vf * w)


def _make_inputs(key, N, H, W):
    k1, k2, k3 = jax.random.split(key, 3)
    pred = jax.random.normal(k1, (N, NUM_CLASSES, H, W), dtype=jnp.float32)
    target = jax.random.randint(k2, (N, H, W), 0, NUM_CLASSES, dtype=jnp.int32)
    ignore_mask = jax.random.bernoulli(k3, 0.1, (N, H, W))
    target = jnp.where(ignore_mask, IGNORE_LABEL, target)
    return pred, target


if __name__ == "__main__":
    key = jax.random.PRNGKey(0)
    k_main, k_pad, k_multi = jax.random.split(key, 3)

    # Main small test: N=2, C=19, 16x16 (single tile, no padding).
    pred, target = _make_inputs(k_main, 2, 16, 16)
    loss = cross_entropy_loss(pred, target, CLASS_WEIGHTS)
    jax.block_until_ready(loss)
    ref = _reference(pred, target, CLASS_WEIGHTS)
    assert jnp.allclose(loss, ref, rtol=1e-4, atol=1e-5), (loss, ref)

    # Padding path: H*W not a multiple of 128.
    pred_p, target_p = _make_inputs(k_pad, 1, 10, 10)
    loss_p = cross_entropy_loss(pred_p, target_p, CLASS_WEIGHTS)
    jax.block_until_ready(loss_p)
    ref_p = _reference(pred_p, target_p, CLASS_WEIGHTS)
    assert jnp.allclose(loss_p, ref_p, rtol=1e-4, atol=1e-5), (loss_p, ref_p)

    # Multi-tile path with a ragged last tile (rows_total=32, rows_tile=24).
    pred_m, target_m = _make_inputs(k_multi, 1, 64, 64)
    loss_m = cross_entropy_loss(pred_m, target_m, CLASS_WEIGHTS, max_rows=24)
    jax.block_until_ready(loss_m)
    ref_m = _reference(pred_m, target_m, CLASS_WEIGHTS)
    assert jnp.allclose(loss_m, ref_m, rtol=1e-4, atol=1e-5), (loss_m, ref_m)

    print("KERNEL_OK")
</pallas_src>

<mosaic_0001>
module attributes {stable_mosaic.version = 11 : i64} {
  func.func @_ce_kernel(%arg0: i32, %arg1: i32, %arg2: memref<1x19x2x128xf32, #tpu.memory_space<vmem>>, %arg3: memref<1x2x128xi32, #tpu.memory_space<vmem>>, %arg4: memref<19xf32, #tpu.memory_space<smem>>, %arg5: memref<1x1x1x128xf32, #tpu.memory_space<vmem>>, %arg6: memref<1x1x1x128xf32, #tpu.memory_space<vmem>>) attributes {dimension_semantics = [#tpu.dimension_semantics<parallel>, #tpu.dimension_semantics<parallel>], iteration_bounds = array<i64: 2, 1>, scalar_prefetch = 0 : i64, scratch_operands = 0 : i64, tpu.core_type = #tpu.core_type<tc>, window_params = [{transform_indices = @transform_0, window_bounds = array<i64: 1, 19, 2, 128>}, {transform_indices = @transform_1, window_bounds = array<i64: 1, 2, 128>}, {transform_indices = @transform_2, window_bounds = array<i64: 19>}, {transform_indices = @transform_3, window_bounds = array<i64: 1, 1, 1, 128>}, {transform_indices = @transform_4, window_bounds = array<i64: 1, 1, 1, 128>}]} {
    %c0 = arith.constant 0 : index
    %c0_0 = arith.constant 0 : index
    %c0_1 = arith.constant 0 : index
    %0 = vector.load %arg3[%c0, %c0_0, %c0_1] : memref<1x2x128xi32, #tpu.memory_space<vmem>>, vector<1x2x128xi32>
    %1 = vector.shape_cast %0 : vector<1x2x128xi32> to vector<2x128xi32>
    %c0_2 = arith.constant 0 : index
    %c0_3 = arith.constant 0 : index
    %c0_4 = arith.constant 0 : index
    %c0_5 = arith.constant 0 : index
    %2 = vector.load %arg2[%c0_2, %c0_3, %c0_4, %c0_5] : memref<1x19x2x128xf32, #tpu.memory_space<vmem>>, vector<1x1x2x128xf32>
    %3 = vector.shape_cast %2 : vector<1x1x2x128xf32> to vector<2x128xf32>
    %c0_6 = arith.constant 0 : index
    %c1 = arith.constant 1 : index
    %c0_7 = arith.constant 0 : index
    %c0_8 = arith.constant 0 : index
    %4 = vector.load %arg2[%c0_6, %c1, %c0_7, %c0_8] : memref<1x19x2x128xf32, #tpu.memory_space<vmem>>, vector<1x1x2x128xf32>
    %5 = vector.shape_cast %4 : vector<1x1x2x128xf32> to vector<2x128xf32>
    %6 = arith.maximumf %3, %5 : vector<2x128xf32>
    %c0_9 = arith.constant 0 : index
    %c2 = arith.constant 2 : index
    %c0_10 = arith.constant 0 : index
    %c0_11 = arith.constant 0 : index
    %7 = vector.load %arg2[%c0_9, %c2, %c0_10, %c0_11] : memref<1x19x2x128xf32, #tpu.memory_space<vmem>>, vector<1x1x2x128xf32>
    %8 = vector.shape_cast %7 : vector<1x1x2x128xf32> to vector<2x128xf32>
    %9 = arith.maximumf %6, %8 : vector<2x128xf32>
    %c0_12 = arith.constant 0 : index
    %c3 = arith.constant 3 : index
    %c0_13 = arith.constant 0 : index
    %c0_14 = arith.constant 0 : index
    %10 = vector.load %arg2[%c0_12, %c3, %c0_13, %c0_14] : memref<1x19x2x128xf32, #tpu.memory_space<vmem>>, vector<1x1x2x128xf32>
    %11 = vector.shape_cast %10 : vector<1x1x2x128xf32> to vector<2x128xf32>
    %12 = arith.maximumf %9, %11 : vector<2x128xf32>
    %c0_15 = arith.constant 0 : index
    %c4 = arith.constant 4 : index
    %c0_16 = arith.constant 0 : index
    %c0_17 = arith.constant 0 : index
    %13 = vector.load %arg2[%c0_15, %c4, %c0_16, %c0_17] : memref<1x19x2x128xf32, #tpu.memory_space<vmem>>, vector<1x1x2x128xf32>
    %14 = vector.shape_cast %13 : vector<1x1x2x128xf32> to vector<2x128xf32>
    %15 = arith.maximumf %12, %14 : vector<2x128xf32>
    %c0_18 = arith.constant 0 : index
    %c5 = arith.constant 5 : index
    %c0_19 = arith.constant 0 : index
    %c0_20 = arith.constant 0 : index
    %16 = vector.load %arg2[%c0_18, %c5, %c0_19, %c0_20] : memref<1x19x2x128xf32, #tpu.memory_space<vmem>>, vector<1x1x2x128xf32>
    %17 = vector.shape_cast %16 : vector<1x1x2x128xf32> to vector<2x128xf32>
    %18 = arith.maximumf %15, %17 : vector<2x128xf32>
    %c0_21 = arith.constant 0 : index
    %c6 = arith.constant 6 : index
    %c0_22 = arith.constant 0 : index
    %c0_23 = arith.constant 0 : index
    %19 = vector.load %arg2[%c0_21, %c6, %c0_22, %c0_23] : memref<1x19x2x128xf32, #tpu.memory_space<vmem>>, vector<1x1x2x128xf32>
    %20 = vector.shape_cast %19 : vector<1x1x2x128xf32> to vector<2x128xf32>
    %21 = arith.maximumf %18, %20 : vector<2x128xf32>
    %c0_24 = arith.constant 0 : index
    %c7 = arith.constant 7 : index
    %c0_25 = arith.constant 0 : index
    %c0_26 = arith.constant 0 : index
    %22 = vector.load %arg2[%c0_24, %c7, %c0_25, %c0_26] : memref<1x19x2x128xf32, #tpu.memory_space<vmem>>, vector<1x1x2x128xf32>
    %23 = vector.shape_cast %22 : vector<1x1x2x128xf32> to vector<2x128xf32>
    %24 = arith.maximumf %21, %23 : vector<2x128xf32>
    %c0_27 = arith.constant 0 : index
    %c8 = arith.constant 8 : index
    %c0_28 = arith.constant 0 : index
    %c0_29 = arith.constant 0 : index
    %25 = vector.load %arg2[%c0_27, %c8, %c0_28, %c0_29] : memref<1x19x2x128xf32, #tpu.memory_space<vmem>>, vector<1x1x2x128xf32>
    %26 = vector.shape_cast %25 : vector<1x1x2x128xf32> to vector<2x128xf32>
    %27 = arith.maximumf %24, %26 : vector<2x128xf32>
    %c0_30 = arith.constant 0 : index
    %c9 = arith.constant 9 : index
    %c0_31 = arith.constant 0 : index
    %c0_32 = arith.constant 0 : index
    %28 = vector.load %arg2[%c0_30, %c9, %c0_31, %c0_32] : memref<1x19x2x128xf32, #tpu.memory_space<vmem>>, vector<1x1x2x128xf32>
    %29 = vector.shape_cast %28 : vector<1x1x2x128xf32> to vector<2x128xf32>
    %30 = arith.maximumf %27, %29 : vector<2x128xf32>
    %c0_33 = arith.constant 0 : index
    %c10 = arith.constant 10 : index
    %c0_34 = arith.constant 0 : index
    %c0_35 = arith.constant 0 : index
    %31 = vector.load %arg2[%c0_33, %c10, %c0_34, %c0_35] : memref<1x19x2x128xf32, #tpu.memory_space<vmem>>, vector<1x1x2x128xf32>
    %32 = vector.shape_cast %31 : vector<1x1x2x128xf32> to vector<2x128xf32>
    %33 = arith.maximumf %30, %32 : vector<2x128xf32>
    %c0_36 = arith.constant 0 : index
    %c11 = arith.constant 11 : index
    %c0_37 = arith.constant 0 : index
    %c0_38 = arith.constant 0 : index
    %34 = vector.load %arg2[%c0_36, %c11, %c0_37, %c0_38] : memref<1x19x2x128xf32, #tpu.memory_space<vmem>>, vector<1x1x2x128xf32>
    %35 = vector.shape_cast %34 : vector<1x1x2x128xf32> to vector<2x128xf32>
    %36 = arith.maximumf %33, %35 : vector<2x128xf32>
    %c0_39 = arith.constant 0 : index
    %c12 = arith.constant 12 : index
    %c0_40 = arith.constant 0 : index
    %c0_41 = arith.constant 0 : index
    %37 = vector.load %arg2[%c0_39, %c12, %c0_40, %c0_41] : memref<1x19x2x128xf32, #tpu.memory_space<vmem>>, vector<1x1x2x128xf32>
    %38 = vector.shape_cast %37 : vector<1x1x2x128xf32> to vector<2x128xf32>
    %39 = arith.maximumf %36, %38 : vector<2x128xf32>
    %c0_42 = arith.constant 0 : index
    %c13 = arith.constant 13 : index
    %c0_43 = arith.constant 0 : index
    %c0_44 = arith.constant 0 : index
    %40 = vector.load %arg2[%c0_42, %c13, %c0_43, %c0_44] : memref<1x19x2x128xf32, #tpu.memory_space<vmem>>, vector<1x1x2x128xf32>
    %41 = vector.shape_cast %40 : vector<1x1x2x128xf32> to vector<2x128xf32>
    %42 = arith.maximumf %39, %41 : vector<2x128xf32>
    %c0_45 = arith.constant 0 : index
    %c14 = arith.constant 14 : index
    %c0_46 = arith.constant 0 : index
    %c0_47 = arith.constant 0 : index
    %43 = vector.load %arg2[%c0_45, %c14, %c0_46, %c0_47] : memref<1x19x2x128xf32, #tpu.memory_space<vmem>>, vector<1x1x2x128xf32>
    %44 = vector.shape_cast %43 : vector<1x1x2x128xf32> to vector<2x128xf32>
    %45 = arith.maximumf %42, %44 : vector<2x128xf32>
    %c0_48 = arith.constant 0 : index
    %c15 = arith.constant 15 : index
    %c0_49 = arith.constant 0 : index
    %c0_50 = arith.constant 0 : index
    %46 = vector.load %arg2[%c0_48, %c15, %c0_49, %c0_50] : memref<1x19x2x128xf32, #tpu.memory_space<vmem>>, vector<1x1x2x128xf32>
    %47 = vector.shape_cast %46 : vector<1x1x2x128xf32> to vector<2x128xf32>
    %48 = arith.maximumf %45, %47 : vector<2x128xf32>
    %c0_51 = arith.constant 0 : index
    %c16 = arith.constant 16 : index
    %c0_52 = arith.constant 0 : index
    %c0_53 = arith.constant 0 : index
    %49 = vector.load %arg2[%c0_51, %c16, %c0_52, %c0_53] : memref<1x19x2x128xf32, #tpu.memory_space<vmem>>, vector<1x1x2x128xf32>
    %50 = vector.shape_cast %49 : vector<1x1x2x128xf32> to vector<2x128xf32>
    %51 = arith.maximumf %48, %50 : vector<2x128xf32>
    %c0_54 = arith.constant 0 : index
    %c17 = arith.constant 17 : index
    %c0_55 = arith.constant 0 : index
    %c0_56 = arith.constant 0 : index
    %52 = vector.load %arg2[%c0_54, %c17, %c0_55, %c0_56] : memref<1x19x2x128xf32, #tpu.memory_space<vmem>>, vector<1x1x2x128xf32>
    %53 = vector.shape_cast %52 : vector<1x1x2x128xf32> to vector<2x128xf32>
    %54 = arith.maximumf %51, %53 : vector<2x128xf32>
    %c0_57 = arith.constant 0 : index
    %c18 = arith.constant 18 : index
    %c0_58 = arith.constant 0 : index
    %c0_59 = arith.constant 0 : index
    %55 = vector.load %arg2[%c0_57, %c18, %c0_58, %c0_59] : memref<1x19x2x128xf32, #tpu.memory_space<vmem>>, vector<1x1x2x128xf32>
    %56 = vector.shape_cast %55 : vector<1x1x2x128xf32> to vector<2x128xf32>
    %57 = arith.maximumf %54, %56 : vector<2x128xf32>
    %cst = arith.constant 0.000000e+00 : f32
    %58 = vector.broadcast %cst : f32 to vector<2x128xf32>
    %cst_60 = arith.constant 0.000000e+00 : f32
    %59 = vector.broadcast %cst_60 : f32 to vector<2x128xf32>
    %cst_61 = arith.constant 0.000000e+00 : f32
    %60 = vector.broadcast %cst_61 : f32 to vector<2x128xf32>
    %c0_62 = arith.constant 0 : index
    %c0_63 = arith.constant 0 : index
    %c0_64 = arith.constant 0 : index
    %c0_65 = arith.constant 0 : index
    %61 = vector.load %arg2[%c0_62, %c0_63, %c0_64, %c0_65] : memref<1x19x2x128xf32, #tpu.memory_space<vmem>>, vector<1x1x2x128xf32>
    %62 = vector.shape_cast %61 : vector<1x1x2x128xf32> to vector<2x128xf32>
    %63 = arith.subf %62, %57 : vector<2x128xf32>
    %64 = math.exp %63 : vector<2x128xf32>
    %65 = arith.addf %58, %64 : vector<2x128xf32>
    %c0_i32 = arith.constant 0 : i32
    %66 = vector.broadcast %c0_i32 : i32 to vector<2x128xi32>
    %67 = arith.cmpi eq, %1, %66 : vector<2x128xi32>
    %68 = arith.select %67, %63, %59 : vector<2x128xi1>, vector<2x128xf32>
    %c0_66 = arith.constant 0 : index
    %69 = memref.load %arg4[%c0_66] : memref<19xf32, #tpu.memory_space<smem>>
    %70 = vector.broadcast %69 : f32 to vector<2x128xf32>
    %71 = arith.select %67, %70, %60 : vector<2x128xi1>, vector<2x128xf32>
    %c0_67 = arith.constant 0 : index
    %c1_68 = arith.constant 1 : index
    %c0_69 = arith.constant 0 : index
    %c0_70 = arith.constant 0 : index
    %72 = vector.load %arg2[%c0_67, %c1_68, %c0_69, %c0_70] : memref<1x19x2x128xf32, #tpu.memory_space<vmem>>, vector<1x1x2x128xf32>
    %73 = vector.shape_cast %72 : vector<1x1x2x128xf32> to vector<2x128xf32>
    %74 = arith.subf %73, %57 : vector<2x128xf32>
    %75 = math.exp %74 : vector<2x128xf32>
    %76 = arith.addf %65, %75 : vector<2x128xf32>
    %c1_i32 = arith.constant 1 : i32
    %77 = vector.broadcast %c1_i32 : i32 to vector<2x128xi32>
    %78 = arith.cmpi eq, %1, %77 : vector<2x128xi32>
    %79 = arith.select %78, %74, %68 : vector<2x128xi1>, vector<2x128xf32>
    %c1_71 = arith.constant 1 : index
    %80 = memref.load %arg4[%c1_71] : memref<19xf32, #tpu.memory_space<smem>>
    %81 = vector.broadcast %80 : f32 to vector<2x128xf32>
    %82 = arith.select %78, %81, %71 : vector<2x128xi1>, vector<2x128xf32>
    %c0_72 = arith.constant 0 : index
    %c2_73 = arith.constant 2 : index
    %c0_74 = arith.constant 0 : index
    %c0_75 = arith.constant 0 : index
    %83 = vector.load %arg2[%c0_72, %c2_73, %c0_74, %c0_75] : memref<1x19x2x128xf32, #tpu.memory_space<vmem>>, vector<1x1x2x128xf32>
    %84 = vector.shape_cast %83 : vector<1x1x2x128xf32> to vector<2x128xf32>
    %85 = arith.subf %84, %57 : vector<2x128xf32>
    %86 = math.exp %85 : vector<2x128xf32>
    %87 = arith.addf %76, %86 : vector<2x128xf32>
    %c2_i32 = arith.constant 2 : i32
    %88 = vector.broadcast %c2_i32 : i32 to vector<2x128xi32>
    %89 = arith.cmpi eq, %1, %88 : vector<2x128xi32>
    %90 = arith.select %89, %85, %79 : vector<2x128xi1>, vector<2x128xf32>
    %c2_76 = arith.constant 2 : index
    %91 = memref.load %arg4[%c2_76] : memref<19xf32, #tpu.memory_space<smem>>
    %92 = vector.broadcast %91 : f32 to vector<2x128xf32>
    %93 = arith.select %89, %92, %82 : vector<2x128xi1>, vector<2x128xf32>
    %c0_77 = arith.constant 0 : index
    %c3_78 = arith.constant 3 : index
    %c0_79 = arith.constant 0 : index
    %c0_80 = arith.constant 0 : index
    %94 = vector.load %arg2[%c0_77, %c3_78, %c0_79, %c0_80] : memref<1x19x2x128xf32, #tpu.memory_space<vmem>>, vector<1x1x2x128xf32>
    %95 = vector.shape_cast %94 : vector<1x1x2x128xf32> to vector<2x128xf32>
    %96 = arith.subf %95, %57 : vector<2x128xf32>
    %97 = math.exp %96 : vector<2x128xf32>
    %98 = arith.addf %87, %97 : vector<2x128xf32>
    %c3_i32 = arith.constant 3 : i32
    %99 = vector.broadcast %c3_i32 : i32 to vector<2x128xi32>
    %100 = arith.cmpi eq, %1, %99 : vector<2x128xi32>
    %101 = arith.select %100, %96, %90 : vector<2x128xi1>, vector<2x128xf32>
    %c3_81 = arith.constant 3 : index
    %102 = memref.load %arg4[%c3_81] : memref<19xf32, #tpu.memory_space<smem>>
    %103 = vector.broadcast %102 : f32 to vector<2x128xf32>
    %104 = arith.select %100, %103, %93 : vector<2x128xi1>, vector<2x128xf32>
    %c0_82 = arith.constant 0 : index
    %c4_83 = arith.constant 4 : index
    %c0_84 = arith.constant 0 : index
    %c0_85 = arith.constant 0 : index
    %105 = vector.load %arg2[%c0_82, %c4_83, %c0_84, %c0_85] : memref<1x19x2x128xf32, #tpu.memory_space<vmem>>, vector<1x1x2x128xf32>
    %106 = vector.shape_cast %105 : vector<1x1x2x128xf32> to vector<2x128xf32>
    %107 = arith.subf %106, %57 : vector<2x128xf32>
    %108 = math.exp %107 : vector<2x128xf32>
    %109 = arith.addf %98, %108 : vector<2x128xf32>
    %c4_i32 = arith.constant 4 : i32
    %110 = vector.broadcast %c4_i32 : i32 to vector<2x128xi32>
    %111 = arith.cmpi eq, %1, %110 : vector<2x128xi32>
    %112 = arith.select %111, %107, %101 : vector<2x128xi1>, vector<2x128xf32>
    %c4_86 = arith.constant 4 : index
    %113 = memref.load %arg4[%c4_86] : memref<19xf32, #tpu.memory_space<smem>>
    %114 = vector.broadcast %113 : f32 to vector<2x128xf32>
    %115 = arith.select %111, %114, %104 : vector<2x128xi1>, vector<2x128xf32>
    %c0_87 = arith.constant 0 : index
    %c5_88 = arith.constant 5 : index
    %c0_89 = arith.constant 0 : index
    %c0_90 = arith.constant 0 : index
    %116 = vector.load %arg2[%c0_87, %c5_88, %c0_89, %c0_90] : memref<1x19x2x128xf32, #tpu.memory_space<vmem>>, vector<1x1x2x128xf32>
    %117 = vector.shape_cast %116 : vector<1x1x2x128xf32> to vector<2x128xf32>
    %118 = arith.subf %117, %57 : vector<2x128xf32>
    %119 = math.exp %118 : vector<2x128xf32>
    %120 = arith.addf %109, %119 : vector<2x128xf32>
    %c5_i32 = arith.constant 5 : i32
    %121 = vector.broadcast %c5_i32 : i32 to vector<2x128xi32>
    %122 = arith.cmpi eq, %1, %121 : vector<2x128xi32>
    %123 = arith.select %122, %118, %112 : vector<2x128xi1>, vector<2x128xf32>
    %c5_91 = arith.constant 5 : index
    %124 = memref.load %arg4[%c5_91] : memref<19xf32, #tpu.memory_space<smem>>
    %125 = vector.broadcast %124 : f32 to vector<2x128xf32>
    %126 = arith.select %122, %125, %115 : vector<2x128xi1>, vector<2x128xf32>
    %c0_92 = arith.constant 0 : index
    %c6_93 = arith.constant 6 : index
    %c0_94 = arith.constant 0 : index
    %c0_95 = arith.constant 0 : index
    %127 = vector.load %arg2[%c0_92, %c6_93, %c0_94, %c0_95] : memref<1x19x2x128xf32, #tpu.memory_space<vmem>>, vector<1x1x2x128xf32>
    %128 = vector.shape_cast %127 : vector<1x1x2x128xf32> to vector<2x128xf32>
    %129 = arith.subf %128, %57 : vector<2x128xf32>
    %130 = math.exp %129 : vector<2x128xf32>
    %131 = arith.addf %120, %130 : vector<2x128xf32>
    %c6_i32 = arith.constant 6 : i32
    %132 = vector.broadcast %c6_i32 : i32 to vector<2x128xi32>
    %133 = arith.cmpi eq, %1, %132 : vector<2x128xi32>
    %134 = arith.select %133, %129, %123 : vector<2x128xi1>, vector<2x128xf32>
    %c6_96 = arith.constant 6 : index
    %135 = memref.load %arg4[%c6_96] : memref<19xf32, #tpu.memory_space<smem>>
    %136 = vector.broadcast %135 : f32 to vector<2x128xf32>
    %137 = arith.select %133, %136, %126 : vector<2x128xi1>, vector<2x128xf32>
    %c0_97 = arith.constant 0 : index
    %c7_98 = arith.constant 7 : index
    %c0_99 = arith.constant 0 : index
    %c0_100 = arith.constant 0 : index
    %138 = vector.load %arg2[%c0_97, %c7_98, %c0_99, %c0_100] : memref<1x19x2x128xf32, #tpu.memory_space<vmem>>, vector<1x1x2x128xf32>
    %139 = vector.shape_cast %138 : vector<1x1x2x128xf32> to vector<2x128xf32>
    %140 = arith.subf %139, %57 : vector<2x128xf32>
    %141 = math.exp %140 : vector<2x128xf32>
    %142 = arith.addf %131, %141 : vector<2x128xf32>
    %c7_i32 = arith.constant 7 : i32
    %143 = vector.broadcast %c7_i32 : i32 to vector<2x128xi32>
    %144 = arith.cmpi eq, %1, %143 : vector<2x128xi32>
    %145 = arith.select %144, %140, %134 : vector<2x128xi1>, vector<2x128xf32>
    %c7_101 = arith.constant 7 : index
    %146 = memref.load %arg4[%c7_101] : memref<19xf32, #tpu.memory_space<smem>>
    %147 = vector.broadcast %146 : f32 to vector<2x128xf32>
    %148 = arith.select %144, %147, %137 : vector<2x128xi1>, vector<2x128xf32>
    %c0_102 = arith.constant 0 : index
    %c8_103 = arith.constant 8 : index
    %c0_104 = arith.constant 0 : index
    %c0_105 = arith.constant 0 : index
    %149 = vector.load %arg2[%c0_102, %c8_103, %c0_104, %c0_105] : memref<1x19x2x128xf32, #tpu.memory_space<vmem>>, vector<1x1x2x128xf32>
    %150 = vector.shape_cast %149 : vector<1x1x2x128xf32> to vector<2x128xf32>
    %151 = arith.subf %150, %57 : vector<2x128xf32>
    %152 = math.exp %151 : vector<2x128xf32>
    %153 = arith.addf %142, %152 : vector<2x128xf32>
    %c8_i32 = arith.constant 8 : i32
    %154 = vector.broadcast %c8_i32 : i32 to vector<2x128xi32>
    %155 = arith.cmpi eq, %1, %154 : vector<2x128xi32>
    %156 = arith.select %155, %151, %145 : vector<2x128xi1>, vector<2x128xf32>
    %c8_106 = arith.constant 8 : index
    %157 = memref.load %arg4[%c8_106] : memref<19xf32, #tpu.memory_space<smem>>
    %158 = vector.broadcast %157 : f32 to vector<2x128xf32>
    %159 = arith.select %155, %158, %148 : vector<2x128xi1>, vector<2x128xf32>
    %c0_107 = arith.constant 0 : index
    %c9_108 = arith.constant 9 : index
    %c0_109 = arith.constant 0 : index
    %c0_110 = arith.constant 0 : index
    %160 = vector.load %arg2[%c0_107, %c9_108, %c0_109, %c0_110] : memref<1x19x2x128xf32, #tpu.memory_space<vmem>>, vector<1x1x2x128xf32>
    %161 = vector.shape_cast %160 : vector<1x1x2x128xf32> to vector<2x128xf32>
    %162 = arith.subf %161, %57 : vector<2x128xf32>
    %163 = math.exp %162 : vector<2x128xf32>
    %164 = arith.addf %153, %163 : vector<2x128xf32>
    %c9_i32 = arith.constant 9 : i32
    %165 = vector.broadcast %c9_i32 : i32 to vector<2x128xi32>
    %166 = arith.cmpi eq, %1, %165 : vector<2x128xi32>
    %167 = arith.select %166, %162, %156 : vector<2x128xi1>, vector<2x128xf32>
    %c9_111 = arith.constant 9 : index
    %168 = memref.load %arg4[%c9_111] : memref<19xf32, #tpu.memory_space<smem>>
    %169 = vector.broadcast %168 : f32 to vector<2x128xf32>
    %170 = arith.select %166, %169, %159 : vector<2x128xi1>, vector<2x128xf32>
    %c0_112 = arith.constant 0 : index
    %c10_113 = arith.constant 10 : index
    %c0_114 = arith.constant 0 : index
    %c0_115 = arith.constant 0 : index
    %171 = vector.load %arg2[%c0_112, %c10_113, %c0_114, %c0_115] : memref<1x19x2x128xf32, #tpu.memory_space<vmem>>, vector<1x1x2x128xf32>
    %172 = vector.shape_cast %171 : vector<1x1x2x128xf32> to vector<2x128xf32>
    %173 = arith.subf %172, %57 : vector<2x128xf32>
    %174 = math.exp %173 : vector<2x128xf32>
    %175 = arith.addf %164, %174 : vector<2x128xf32>
    %c10_i32 = arith.constant 10 : i32
    %176 = vector.broadcast %c10_i32 : i32 to vector<2x128xi32>
    %177 = arith.cmpi eq, %1, %176 : vector<2x128xi32>
    %178 = arith.select %177, %173, %167 : vector<2x128xi1>, vector<2x128xf32>
    %c10_116 = arith.constant 10 : index
    %179 = memref.load %arg4[%c10_116] : memref<19xf32, #tpu.memory_space<smem>>
    %180 = vector.broadcast %179 : f32 to vector<2x128xf32>
    %181 = arith.select %177, %180, %170 : vector<2x128xi1>, vector<2x128xf32>
    %c0_117 = arith.constant 0 : index
    %c11_118 = arith.constant 11 : index
    %c0_119 = arith.constant 0 : index
    %c0_120 = arith.constant 0 : index
    %182 = vector.load %arg2[%c0_117, %c11_118, %c0_119, %c0_120] : memref<1x19x2x128xf32, #tpu.memory_space<vmem>>, vector<1x1x2x128xf32>
    %183 = vector.shape_cast %182 : vector<1x1x2x128xf32> to vector<2x128xf32>
    %184 = arith.subf %183, %57 : vector<2x128xf32>
    %185 = math.exp %184 : vector<2x128xf32>
    %186 = arith.addf %175, %185 : vector<2x128xf32>
    %c11_i32 = arith.constant 11 : i32
    %187 = vector.broadcast %c11_i32 : i32 to vector<2x128xi32>
    %188 = arith.cmpi eq, %1, %187 : vector<2x128xi32>
    %189 = arith.select %188, %184, %178 : vector<2x128xi1>, vector<2x128xf32>
    %c11_121 = arith.constant 11 : index
    %190 = memref.load %arg4[%c11_121] : memref<19xf32, #tpu.memory_space<smem>>
    %191 = vector.broadcast %190 : f32 to vector<2x128xf32>
    %192 = arith.select %188, %191, %181 : vector<2x128xi1>, vector<2x128xf32>
    %c0_122 = arith.constant 0 : index
    %c12_123 = arith.constant 12 : index
    %c0_124 = arith.constant 0 : index
    %c0_125 = arith.constant 0 : index
    %193 = vector.load %arg2[%c0_122, %c12_123, %c0_124, %c0_125] : memref<1x19x2x128xf32, #tpu.memory_space<vmem>>, vector<1x1x2x128xf32>
    %194 = vector.shape_cast %193 : vector<1x1x2x128xf32> to vector<2x128xf32>
    %195 = arith.subf %194, %57 : vector<2x128xf32>
    %196 = math.exp %195 : vector<2x128xf32>
    %197 = arith.addf %186, %196 : vector<2x128xf32>
    %c12_i32 = arith.constant 12 : i32
    %198 = vector.broadcast %c12_i32 : i32 to vector<2x128xi32>
    %199 = arith.cmpi eq, %1, %198 : vector<2x128xi32>
    %200 = arith.select %199, %195, %189 : vector<2x128xi1>, vector<2x128xf32>
    %c12_126 = arith.constant 12 : index
    %201 = memref.load %arg4[%c12_126] : memref<19xf32, #tpu.memory_space<smem>>
    %202 = vector.broadcast %201 : f32 to vector<2x128xf32>
    %203 = arith.select %199, %202, %192 : vector<2x128xi1>, vector<2x128xf32>
    %c0_127 = arith.constant 0 : index
    %c13_128 = arith.constant 13 : index
    %c0_129 = arith.constant 0 : index
    %c0_130 = arith.constant 0 : index
    %204 = vector.load %arg2[%c0_127, %c13_128, %c0_129, %c0_130] : memref<1x19x2x128xf32, #tpu.memory_space<vmem>>, vector<1x1x2x128xf32>
    %205 = vector.shape_cast %204 : vector<1x1x2x128xf32> to vector<2x128xf32>
    %206 = arith.subf %205, %57 : vector<2x128xf32>
    %207 = math.exp %206 : vector<2x128xf32>
    %208 = arith.addf %197, %207 : vector<2x128xf32>
    %c13_i32 = arith.constant 13 : i32
    %209 = vector.broadcast %c13_i32 : i32 to vector<2x128xi32>
    %210 = arith.cmpi eq, %1, %209 : vector<2x128xi32>
    %211 = arith.select %210, %206, %200 : vector<2x128xi1>, vector<2x128xf32>
    %c13_131 = arith.constant 13 : index
    %212 = memref.load %arg4[%c13_131] : memref<19xf32, #tpu.memory_space<smem>>
    %213 = vector.broadcast %212 : f32 to vector<2x128xf32>
    %214 = arith.select %210, %213, %203 : vector<2x128xi1>, vector<2x128xf32>
    %c0_132 = arith.constant 0 : index
    %c14_133 = arith.constant 14 : index
    %c0_134 = arith.constant 0 : index
    %c0_135 = arith.constant 0 : index
    %215 = vector.load %arg2[%c0_132, %c14_133, %c0_134, %c0_135] : memref<1x19x2x128xf32, #tpu.memory_space<vmem>>, vector<1x1x2x128xf32>
    %216 = vector.shape_cast %215 : vector<1x1x2x128xf32> to vector<2x128xf32>
    %217 = arith.subf %216, %57 : vector<2x128xf32>
    %218 = math.exp %217 : vector<2x128xf32>
    %219 = arith.addf %208, %218 : vector<2x128xf32>
    %c14_i32 = arith.constant 14 : i32
    %220 = vector.broadcast %c14_i32 : i32 to vector<2x128xi32>
    %221 = arith.cmpi eq, %1, %220 : vector<2x128xi32>
    %222 = arith.select %221, %217, %211 : vector<2x128xi1>, vector<2x128xf32>
    %c14_136 = arith.constant 14 : index
    %223 = memref.load %arg4[%c14_136] : memref<19xf32, #tpu.memory_space<smem>>
    %224 = vector.broadcast %223 : f32 to vector<2x128xf32>
    %225 = arith.select %221, %224, %214 : vector<2x128xi1>, vector<2x128xf32>
    %c0_137 = arith.constant 0 : index
    %c15_138 = arith.constant 15 : index
    %c0_139 = arith.constant 0 : index
    %c0_140 = arith.constant 0 : index
    %226 = vector.load %arg2[%c0_137, %c15_138, %c0_139, %c0_140] : memref<1x19x2x128xf32, #tpu.memory_space<vmem>>, vector<1x1x2x128xf32>
    %227 = vector.shape_cast %226 : vector<1x1x2x128xf32> to vector<2x128xf32>
    %228 = arith.subf %227, %57 : vector<2x128xf32>
    %229 = math.exp %228 : vector<2x128xf32>
    %230 = arith.addf %219, %229 : vector<2x128xf32>
    %c15_i32 = arith.constant 15 : i32
    %231 = vector.broadcast %c15_i32 : i32 to vector<2x128xi32>
    %232 = arith.cmpi eq, %1, %231 : vector<2x128xi32>
    %233 = arith.select %232, %228, %222 : vector<2x128xi1>, vector<2x128xf32>
    %c15_141 = arith.constant 15 : index
    %234 = memref.load %arg4[%c15_141] : memref<19xf32, #tpu.memory_space<smem>>
    %235 = vector.broadcast %234 : f32 to vector<2x128xf32>
    %236 = arith.select %232, %235, %225 : vector<2x128xi1>, vector<2x128xf32>
    %c0_142 = arith.constant 0 : index
    %c16_143 = arith.constant 16 : index
    %c0_144 = arith.constant 0 : index
    %c0_145 = arith.constant 0 : index
    %237 = vector.load %arg2[%c0_142, %c16_143, %c0_144, %c0_145] : memref<1x19x2x128xf32, #tpu.memory_space<vmem>>, vector<1x1x2x128xf32>
    %238 = vector.shape_cast %237 : vector<1x1x2x128xf32> to vector<2x128xf32>
    %239 = arith.subf %238, %57 : vector<2x128xf32>
    %240 = math.exp %239 : vector<2x128xf32>
    %241 = arith.addf %230, %240 : vector<2x128xf32>
    %c16_i32 = arith.constant 16 : i32
    %242 = vector.broadcast %c16_i32 : i32 to vector<2x128xi32>
    %243 = arith.cmpi eq, %1, %242 : vector<2x128xi32>
    %244 = arith.select %243, %239, %233 : vector<2x128xi1>, vector<2x128xf32>
    %c16_146 = arith.constant 16 : index
    %245 = memref.load %arg4[%c16_146] : memref<19xf32, #tpu.memory_space<smem>>
    %246 = vector.broadcast %245 : f32 to vector<2x128xf32>
    %247 = arith.select %243, %246, %236 : vector<2x128xi1>, vector<2x128xf32>
    %c0_147 = arith.constant 0 : index
    %c17_148 = arith.constant 17 : index
    %c0_149 = arith.constant 0 : index
    %c0_150 = arith.constant 0 : index
    %248 = vector.load %arg2[%c0_147, %c17_148, %c0_149, %c0_150] : memref<1x19x2x128xf32, #tpu.memory_space<vmem>>, vector<1x1x2x128xf32>
    %249 = vector.shape_cast %248 : vector<1x1x2x128xf32> to vector<2x128xf32>
    %250 = arith.subf %249, %57 : vector<2x128xf32>
    %251 = math.exp %250 : vector<2x128xf32>
    %252 = arith.addf %241, %251 : vector<2x128xf32>
    %c17_i32 = arith.constant 17 : i32
    %253 = vector.broadcast %c17_i32 : i32 to vector<2x128xi32>
    %254 = arith.cmpi eq, %1, %253 : vector<2x128xi32>
    %255 = arith.select %254, %250, %244 : vector<2x128xi1>, vector<2x128xf32>
    %c17_151 = arith.constant 17 : index
    %256 = memref.load %arg4[%c17_151] : memref<19xf32, #tpu.memory_space<smem>>
    %257 = vector.broadcast %256 : f32 to vector<2x128xf32>
    %258 = arith.select %254, %257, %247 : vector<2x128xi1>, vector<2x128xf32>
    %c0_152 = arith.constant 0 : index
    %c18_153 = arith.constant 18 : index
    %c0_154 = arith.constant 0 : index
    %c0_155 = arith.constant 0 : index
    %259 = vector.load %arg2[%c0_152, %c18_153, %c0_154, %c0_155] : memref<1x19x2x128xf32, #tpu.memory_space<vmem>>, vector<1x1x2x128xf32>
    %260 = vector.shape_cast %259 : vector<1x1x2x128xf32> to vector<2x128xf32>
    %261 = arith.subf %260, %57 : vector<2x128xf32>
    %262 = math.exp %261 : vector<2x128xf32>
    %263 = arith.addf %252, %262 : vector<2x128xf32>
    %c18_i32 = arith.constant 18 : i32
    %264 = vector.broadcast %c18_i32 : i32 to vector<2x128xi32>
    %265 = arith.cmpi eq, %1, %264 : vector<2x128xi32>
    %266 = arith.select %265, %261, %255 : vector<2x128xi1>, vector<2x128xf32>
    %c18_156 = arith.constant 18 : index
    %267 = memref.load %arg4[%c18_156] : memref<19xf32, #tpu.memory_space<smem>>
    %268 = vector.broadcast %267 : f32 to vector<2x128xf32>
    %269 = arith.select %265, %268, %258 : vector<2x128xi1>, vector<2x128xf32>
    %c255_i32 = arith.constant 255 : i32
    %270 = vector.broadcast %c255_i32 : i32 to vector<2x128xi32>
    %271 = arith.cmpi ne, %1, %270 : vector<2x128xi32>
    %272 = math.log %263 : vector<2x128xf32>
    %273 = arith.subf %272, %266 : vector<2x128xf32>
    %274 = arith.mulf %269, %273 : vector<2x128xf32>
    %cst_157 = arith.constant 0.000000e+00 : f32
    %275 = vector.broadcast %cst_157 : f32 to vector<2x128xf32>
    %276 = arith.select %271, %274, %275 : vector<2x128xi1>, vector<2x128xf32>
    %cst_158 = arith.constant 0.000000e+00 : f32
    %277 = vector.broadcast %cst_158 : f32 to vector<2x128xf32>
    %278 = arith.select %271, %269, %277 : vector<2x128xi1>, vector<2x128xf32>
    %cst_159 = arith.constant dense<0.000000e+00> : vector<128xf32>
    %279 = vector.multi_reduction <add>, %276, %cst_159 [0] : vector<2x128xf32> to vector<128xf32>
    %280 = vector.shape_cast %279 : vector<128xf32> to vector<1x128xf32>
    %c0_160 = arith.constant 0 : index
    %c0_161 = arith.constant 0 : index
    %c0_162 = arith.constant 0 : index
    %c0_163 = arith.constant 0 : index
    %281 = vector.load %arg5[%c0_160, %c0_161, %c0_162, %c0_163] : memref<1x1x1x128xf32, #tpu.memory_space<vmem>>, vector<1x1x1x128xf32>
    %282 = vector.shape_cast %281 : vector<1x1x1x128xf32> to vector<1x128xf32>
    %283 = vector.shape_cast %280 : vector<1x128xf32> to vector<1x1x1x128xf32>
    tpu.vector_store %arg5[%c0_160, %c0_161, %c0_162, %c0_163], %283 {strides = array<i32>} : memref<1x1x1x128xf32, #tpu.memory_space<vmem>>, vector<1x1x1x128xf32>,
    %cst_164 = arith.constant dense<0.000000e+00> : vector<128xf32>
    %284 = vector.multi_reduction <add>, %278, %cst_164 [0] : vector<2x128xf32> to vector<128xf32>
    %285 = vector.shape_cast %284 : vector<128xf32> to vector<1x128xf32>
    %c0_165 = arith.constant 0 : index
    %c0_166 = arith.constant 0 : index
    %c0_167 = arith.constant 0 : index
    %c0_168 = arith.constant 0 : index
    %286 = vector.load %arg6[%c0_165, %c0_166, %c0_167, %c0_168] : memref<1x1x1x128xf32, #tpu.memory_space<vmem>>, vector<1x1x1x128xf32>
    %287 = vector.shape_cast %286 : vector<1x1x1x128xf32> to vector<1x128xf32>
    %288 = vector.shape_cast %285 : vector<1x128xf32> to vector<1x1x1x128xf32>
    tpu.vector_store %arg6[%c0_165, %c0_166, %c0_167, %c0_168], %288 {strides = array<i32>} : memref<1x1x1x128xf32, #tpu.memory_space<vmem>>, vector<1x1x1x128xf32>,
    return
  }
  func.func @transform_0(%arg0: i32, %arg1: i32) -> (i32, i32, i32, i32) {
    %c0_i32 = arith.constant 0 : i32
    %c0_i32_0 = arith.constant 0 : i32
    %c0_i32_1 = arith.constant 0 : i32
    return %arg0, %c0_i32, %arg1, %c0_i32_0 : i32, i32, i32, i32
  }
  func.func @transform_1(%arg0: i32, %arg1: i32) -> (i32, i32, i32) {
    %c0_i32 = arith.constant 0 : i32
    %c0_i32_0 = arith.constant 0 : i32
    return %arg0, %arg1, %c0_i32 : i32, i32, i32
  }
  func.func @transform_2(%arg0: i32, %arg1: i32) -> i32 {
    %c0_i32 = arith.constant 0 : i32
    %c0_i32_0 = arith.constant 0 : i32
    return %c0_i32 : i32
  }
  func.func @transform_3(%arg0: i32, %arg1: i32) -> (i32, i32, i32, i32) {
    %c0_i32 = arith.constant 0 : i32
    %c0_i32_0 = arith.constant 0 : i32
    %c0_i32_1 = arith.constant 0 : i32
    return %arg0, %arg1, %c0_i32, %c0_i32_0 : i32, i32, i32, i32
  }
  func.func @transform_4(%arg0: i32, %arg1: i32) -> (i32, i32, i32, i32) {
    %c0_i32 = arith.constant 0 : i32
    %c0_i32_0 = arith.constant 0 : i32
    %c0_i32_1 = arith.constant 0 : i32
    return %arg0, %arg1, %c0_i32, %c0_i32_0 : i32, i32, i32, i32
  }
}

</mosaic_0001>

<bundles_post_ra>
// kernel: cross_entropy_loss.1
= control target key start
LH: loop header
LB: loop body
LE: loop exit
PB: predicated region body
PF: predicated region fallthrough
CT: control target
= control target key end

     0   :  { %10 = vsyncpa [#allocation3], 0  ;;  %s861_s15 = smov 0   ;;  %s863_s16 = smov 0   ;;  %s1186_s0 = inlined_call_operand.vmem [shape: f32[2,19,2,128], index: 0, kind: input, shape index: {}]   ;;  %s1187_s1 = inlined_call_operand.vmem [shape: s32[2,2,128], index: 1, kind: input, shape index: {}]   ;;  %s1188_s2 = inlined_call_operand.vmem [shape: f32[19], index: 2, kind: input, shape index: {}]   ;;  %s1189_s3 = inlined_call_operand.vmem [shape: f32[2,1,1,128], index: 3, kind: output, shape index: {0}]   ;;  %s1190_s4 = inlined_call_operand.vmem [shape: f32[2,1,1,128], index: 4, kind: output, shape index: {1}]  }
   0x1   :  { %s865_s17 = smov 0  }
   0x2 LB: > { %s669_s18 = sadd.s32 4294967295, %s833_s17   ;;  %s28_s19 = sadd.s32 1, %s829_s16  ;;  %s833_s17 = sphi %s865_s17, %s16_s17   ;;  %s829_s16 = sphi %s863_s16, %s1192_s16   ;;  %s825_s15 = sphi %s861_s15, %s1191_s15  }
   0x3   : > { %p30_p0 = scmp.ge.s32.totalorder %s28_s19, 2  ;;  %p671_p1 = scmp.ge.s32.totalorder %s833_s17, 1 }
   0x4   : > { %p166_p2 = scmp.lt.s32.totalorder %s833_s17, 3  ;;  %p725_p4 = scmp.eq.s32.totalorder %s669_s18, 0 }
   0x5   : > { %s1194_s19 = smov (%p30_p0, %s28_s19), 0  ;;  %s178_s22 = sshll.u32 %s1188_s2, 4  ;;  %s179_s22 = int_to_ptr.vmem [resolvable:$true] %s178_s22 }
   0x6   : > { %p167_p3 = pnand %p671_p1, %p166_p2  ;;  %s835_s23 = smov [#allocation2]  }
   0x8   : > { %p721_p5 = pneg %p167_p3  ;;  %212 = sbr.rel (%p167_p3) target bundleno = 135 (0x87), region = 32 }
   0xa   : > { %p722_p6 = pnand %p725_p4, %p721_p5 }
   0xc   : > { %724 = dma.vmem_to_smem (!%p722_p6), %s179_s22, 16, %s835_s23, [#allocation3]  }
   0xd   : > { %820 = dma.done.wait (%p725_p4), [#allocation3], 16  }
   0xe   : > { %822 = vsyncadd (%p725_p4), [#allocation3], 4294967280 }
   0xf   : > { %219 = sfence }
  0x10   : > { %p257_p7 = scmp.lt.s32.totalorder %s825_s15, 1  ;;  %s346_s28 = sld [smem:[#allocation2]] }
  0x11   : > { %s696_s7 = sld [smem:[#allocation2 + $0x1]] }
  0x12   : > { %s1196_s15 = smov (!%p257_p7, %s825_s15), 1  ;;  %s697_s8 = sld [smem:[#allocation2 + $0x2]] }
  0x13   : > { %s716_s24 = smul.u32 38, %s1196_s15  ;;  %s677_s29 = sshll.u32 %s1196_s15, 1 }
  0x14   : > { %s271_s6 = scalar_lea.vmem %s1187_s1, %s677_s29  ;;  %s698_s9 = sld [smem:[#allocation2 + $0x3]] }
  0x15   : > { %s889_s27 = scalar_lea.vmem %s1186_s0, %s716_s24  ;;  %v925_v13 = vld [vmem:[%s271_s6] sm:$0x3]  ;;  %s699_s10 = sld [smem:[#allocation2 + $0x4]] }
  0x16   : > { %v892_v0 = vld [vmem:[%s889_s27] sm:$0x3]  ;;  %v895_v1 = vld [vmem:[%s889_s27 + $0x2] sm:$0x3]  ;;  %v898_v2 = vld [vmem:[%s889_s27 + $0x4] sm:$0x3]  ;;  %v347_v16 = vstv %s346_s28  ;;  %s283_s5 = scalar_lea.vmem %s1190_s4, %s1196_s15 }
  0x17   : > { %v288_v3 = vmax.f32 %v892_v0, %v895_v1  ;;  %v903_v4 = vld [vmem:[%s889_s27 + $0x6] sm:$0x3]  ;;  %v907_v6 = vld [vmem:[%s889_s27 + $0x8] sm:$0x3]  ;;  %v912_v8 = vld [vmem:[%s889_s27 + $0xa] sm:$0x3]  ;;  %v356_v23 = vstv %s696_s7 }
  0x18   : > { %v919_v10 = vld [vmem:[%s889_s27 + $0xc] sm:$0x3]  ;;  %v923_v12 = vld [vmem:[%s889_s27 + $0xe] sm:$0x3]  ;;  %v929_v15 = vld [vmem:[%s889_s27 + $0x10] sm:$0x3]  ;;  %v365_v27 = vstv %s697_s8  ;;  %s277_s8 = scalar_lea.vmem %s1189_s3, %s1196_s15 }
  0x19   : > { %v291_v5 = vmax.f32 %v288_v3, %v898_v2  ;;  %v933_v18 = vld [vmem:[%s889_s27 + $0x12] sm:$0x3]  ;;  %vm344_vm0 = vcmp.eq.s32.totalorder %v925_v13, 0  ;;  %v940_v21 = vld [vmem:[%s889_s27 + $0x14] sm:$0x3]  ;;  %vm353_vm1 = vcmp.eq.s32.totalorder %v925_v13, 1 }
  0x1a   : > { %v348_v20 = vsel %vm344_vm0, %v347_v16, 0.0  ;;  %v945_v24 = vld [vmem:[%s889_s27 + $0x16] sm:$0x3]  ;;  %s700_s11 = sld [smem:[#allocation2 + $0x5]]  ;;  %vm362_vm2 = vcmp.eq.s32.totalorder %v925_v13, 2  ;;  %v374_v31 = vstv %s698_s9  ;;  %vm371_vm3 = vcmp.eq.s32.totalorder %v925_v13, 3 }
  0x1b   : > { %v294_v7 = vmax.f32 %v291_v5, %v903_v4  ;;  %v357_v25 = vsel %vm353_vm1, %v356_v23, %v348_v20  ;;  %v952_v28 = vld [vmem:[%s889_s27 + $0x18] sm:$0x3]  ;;  %s701_s12 = sld [smem:[#allocation2 + $0x6]]  ;;  %v958_v32 = vld [vmem:[%s889_s27 + $0x1a] sm:$0x3]  ;;  %v383_v35 = vstv %s699_s10  ;;  %vm380_vm4 = vcmp.eq.s32.totalorder %v925_v13, 4 }
  0x1c   : > { %v366_v29 = vsel %vm362_vm2, %v365_v27, %v357_v25  ;;  %v965_v36 = vld [vmem:[%s889_s27 + $0x1c] sm:$0x3]  ;;  %s702_s13 = sld [smem:[#allocation2 + $0x7]]  ;;  %v970_v38 = vld [vmem:[%s889_s27 + $0x1e] sm:$0x3]  ;;  %vm389_vm5 = vcmp.eq.s32.totalorder %v925_v13, 5 }
  0x1d   : > { %v297_v9 = vmax.f32 %v294_v7, %v907_v6  ;;  %v375_v34 = vsel %vm371_vm3, %v374_v31, %v366_v29  ;;  %s703_s14 = sld [smem:[#allocation2 + $0x8]]  ;;  %v976_v42 = vld [vmem:[%s889_s27 + $0x20] sm:$0x3]  ;;  %v983_v46 = vld [vmem:[%s889_s27 + $0x22] sm:$0x3]  ;;  %vm398_vm6 = vcmp.eq.s32.totalorder %v925_v13, 6 }
  0x1e   : > { %v384_v39 = vsel %vm380_vm4, %v383_v35, %v375_v34  ;;  %s985_s18 = sld [smem:[#allocation2 + $0x9]]  ;;  %v990_v48 = vld [vmem:[%s889_s27 + $0x24] sm:$0x3]  ;;  %vm407_vm7 = vcmp.eq.s32.totalorder %v925_v13, 7  ;;  %vm416_vm8 = vcmp.eq.s32.totalorder %v925_v13, 8  ;;  %vm425_vm9 = vcmp.eq.s32.totalorder %v925_v13, 9 }
  0x1f   : > { %v300_v11 = vmax.f32 %v297_v9, %v912_v8  ;;  %s995_s20 = sld [smem:[#allocation2 + $0xa]]  ;;  %vm434_vm10 = vcmp.eq.s32.totalorder %v925_v13, 10  ;;  %vm443_vm11 = vcmp.eq.s32.totalorder %v925_v13, 11  ;;  %vm452_vm12 = vcmp.eq.s32.totalorder %v925_v13, 12 }
  0x20   : > { %v392_v40 = vstv %s700_s11  ;;  %s1017_s21 = sld [smem:[#allocation2 + $0xb]]  ;;  %vm461_vm13 = vcmp.eq.s32.totalorder %v925_v13, 13  ;;  %vm470_vm14 = vcmp.eq.s32.totalorder %v925_v13, 14  ;;  %vm479_vm15 = vcmp.eq.s32.totalorder %v925_v13, 15 }
  0x21   : > { %v303_v14 = vmax.f32 %v300_v11, %v919_v10  ;;  %v393_v44 = vsel %vm389_vm5, %v392_v40, %v384_v39  ;;  %v401_v45 = vstv %s701_s12  ;;  %s1026_s22 = sld [smem:[#allocation2 + $0xc]] }
  0x22   : > { %v402_v49 = vsel %vm398_vm6, %v401_v45, %v393_v44  ;;  %v410_v50 = vstv %s702_s13  ;;  %s1042_s23 = sld [smem:[#allocation2 + $0xd]] }
  0x23   : > { %v306_v17 = vmax.f32 %v303_v14, %v923_v12  ;;  %v411_v53 = vsel %vm407_vm7, %v410_v50, %v402_v49  ;;  %v419_v54 = vstv %s703_s14  ;;  %s1050_s24 = sld [smem:[#allocation2 + $0xe]] }
  0x24   : > { %v420_v60 = vsel %vm416_vm8, %v419_v54, %v411_v53  ;;  %v428_v61 = vstv %s985_s18  ;;  %s1061_s25 = sld [smem:[#allocation2 + $0xf]] }
  0x25   : > { %v309_v19 = vmax.f32 %v306_v17, %v929_v15  ;;  %v437_v7 = vstv %s995_s20  ;;  %s1070_s26 = sld [smem:[#allocation2 + $0x10]] }
  0x26   : > { %s1081_s27 = sld [smem:[#allocation2 + $0x11]] }
  0x27   : > { %v312_v22 = vmax.f32 %v309_v19, %v933_v18  ;;  %v455_v29 = vstv %s1026_s22  ;;  %s1092_s28 = sld [smem:[#allocation2 + $0x12]] }
  0x29   : > { %v315_v26 = vmax.f32 %v312_v22, %v940_v21  ;;  %v473_v50 = vstv %s1050_s24 }
  0x2b   : > { %v318_v30 = vmax.f32 %v315_v26, %v945_v24 }
  0x2d   : > { %v321_v33 = vmax.f32 %v318_v30, %v952_v28 }
  0x2f   : > { %v324_v37 = vmax.f32 %v321_v33, %v958_v32 }
  0x31   : > { %v327_v41 = vmax.f32 %v324_v37, %v965_v36 }
  0x33   : > { %v330_v43 = vmax.f32 %v327_v41, %v970_v38 }
  0x35   : > { %v333_v47 = vmax.f32 %v330_v43, %v976_v42  ;;  %v464_v43 = vstv %s1042_s23 }
  0x37   : > { %v336_v51 = vmax.f32 %v333_v47, %v983_v46 }
  0x39   : > { %v999_v52 = vmax.f32 %v336_v51, %v990_v48 }
  0x3b   : > { %v340_v55 = vsub.f32 %v892_v0, %v999_v52  ;;  %v349_v56 = vsub.f32 %v895_v1, %v999_v52  ;;  %v358_v57 = vsub.f32 %v898_v2, %v999_v52  ;;  %v367_v58 = vsub.f32 %v903_v4, %v999_v52 }
  0x3c   : > { %v376_v59 = vsub.f32 %v907_v6, %v999_v52  ;;  %v385_v4 = vsub.f32 %v912_v8, %v999_v52  ;;  %v429_v6 = vsel %vm425_vm9, %v428_v61, %v420_v60  ;;  %v394_v14 = vsub.f32 %v919_v10, %v999_v52 }
  0x3d   : > { %v341_v62 = vmul.f32 1.442695, %v340_v55  ;;  %v345_v63 = vsel %vm344_vm0, %v340_v55, 0.0  ;;  %v350_v0 = vmul.f32 1.442695, %v349_v56  ;;  %v403_v8 = vsub.f32 %v923_v12, %v999_v52 }
  0x3e   : > { %v354_v1 = vsel %vm353_vm1, %v349_v56, %v345_v63  ;;  %v359_v2 = vmul.f32 1.442695, %v358_v57  ;;  %v368_v3 = vmul.f32 1.442695, %v367_v58  ;;  %v377_v11 = vmul.f32 1.442695, %v376_v59 }
  0x3f   : > { %752 = vpow2.f32 %v341_v62  ;;  %v363_v5 = vsel %vm362_vm2, %v358_v57, %v354_v1  ;;  %v386_v16 = vmul.f32 1.442695, %v385_v4  ;;  %v438_v17 = vsel %vm434_vm10, %v437_v7, %v429_v6 }
  0x40   : > { %754 = vpow2.f32 %v350_v0  ;;  %v372_v9 = vsel %vm371_vm3, %v367_v58, %v363_v5  ;;  %v412_v10 = vsub.f32 %v929_v15, %v999_v52  ;;  %v395_v20 = vmul.f32 1.442695, %v394_v14 }
  0x41   : > { %756 = vpow2.f32 %v359_v2  ;;  %v381_v19 = vsel %vm380_vm4, %v376_v59, %v372_v9  ;;  %v446_v12 = vstv %s1017_s21  ;;  %v404_v23 = vmul.f32 1.442695, %v403_v8 }
  0x42   : > { %758 = vpow2.f32 %v368_v3  ;;  %v447_v25 = vsel %vm443_vm11, %v446_v12, %v438_v17  ;;  %v390_v27 = vsel %vm389_vm5, %v385_v4, %v381_v19  ;;  %v1058_v15 = vsub.f32 %v933_v18, %v999_v52 }
  0x43   : > { %760 = vpow2.f32 %v377_v11  ;;  %v1065_v33 = vsub.f32 %v940_v21, %v999_v52  ;;  %v413_v35 = vmul.f32 1.442695, %v412_v10  ;;  %v456_v37 = vsel %vm452_vm12, %v455_v29, %v447_v25 }
  0x44   : > { %762 = vpow2.f32 %v386_v16  ;;  %v399_v39 = vsel %vm398_vm6, %v394_v14, %v390_v27  ;;  %v1076_v40 = vsub.f32 %v945_v24, %v999_v52  ;;  %v422_v41 = vmul.f32 1.442695, %v1058_v15 }
  0x45   : > { %v753_v22 = vpop.eup %752  ;;  %764 = vpow2.f32 %v395_v20  ;;  %v431_v45 = vmul.f32 1.442695, %v1065_v33  ;;  %v465_v47 = vsel %vm461_vm13, %v464_v43, %v456_v37  ;;  %v1088_v24 = vsub.f32 %v952_v28, %v999_v52 }
  0x46   : > { %v755_v26 = vpop.eup %754  ;;  %766 = vpow2.f32 %v404_v23  ;;  %v408_v53 = vsel %vm407_vm7, %v403_v8, %v399_v39  ;;  %v440_v54 = vmul.f32 1.442695, %v1076_v40  ;;  %v474_v55 = vsel %vm470_vm14, %v473_v50, %v465_v47 }
  0x47   : > { %v757_v30 = vpop.eup %756  ;;  %v352_v31 = vadd.f32 %v755_v26, %v753_v22  ;;  %768 = vpow2.f32 %v413_v35  ;;  %v1101_v28 = vsub.f32 %v958_v32, %v999_v52  ;;  %v482_v57 = vstv %s1061_s25 }
  0x48   : > { %v759_v34 = vpop.eup %758  ;;  %770 = vpow2.f32 %v422_v41  ;;  %v1107_v59 = vsub.f32 %v965_v36, %v999_v52  ;;  %v483_v60 = vsel %vm479_vm15, %v482_v57, %v474_v55  ;;  %v449_v62 = vmul.f32 1.442695, %v1088_v24 }
  0x49   : > { %v361_v18 = vadd.f32 %v757_v30, %v352_v31  ;;  %v761_v21 = vpop.eup %760  ;;  %772 = vpow2.f32 %v431_v45  ;;  %vm488_vm0 = vcmp.eq.s32.totalorder %v925_v13, 16  ;;  %v491_v32 = vstv %s1070_s26 }
  0x4a   : > { %v763_v49 = vpop.eup %762  ;;  %v417_v0 = vsel %vm416_vm8, %v412_v10, %v408_v53  ;;  %v492_v1 = vsel %vm488_vm0, %v491_v32, %v483_v60  ;;  %774 = vpow2.f32 %v440_v54  ;;  %v458_v2 = vmul.f32 1.442695, %v1101_v28 }
  0x4b   : > { %v370_v44 = vadd.f32 %v759_v34, %v361_v18  ;;  %v765_v56 = vpop.eup %764  ;;  %v475_v3 = vsub.f32 %v970_v38, %v999_v52  ;;  %v500_v4 = vstv %s1081_s27  ;;  %v467_v6 = vmul.f32 1.442695, %v1107_v59 }
  0x4c   : > { %v767_v61 = vpop.eup %766  ;;  %vm497_vm1 = vcmp.eq.s32.totalorder %v925_v13, 17  ;;  %776 = vpow2.f32 %v449_v62  ;;  %v484_v9 = vsub.f32 %v976_v42, %v999_v52  ;;  %v509_v14 = vstv %s1092_s28 }
  0x4d   : > { %v379_v51 = vadd.f32 %v761_v21, %v370_v44  ;;  %v769_v36 = vpop.eup %768  ;;  %v501_v11 = vsel %vm497_vm1, %v500_v4, %v492_v1  ;;  %v426_v38 = vsel %vm425_vm9, %v1058_v15, %v417_v0  ;;  %vm511_vm2 = vcmp.ne.s32.totalorder %v925_v13, 255 }
  0x4e   : > { %v771_v7 = vpop.eup %770  ;;  %778 = vpow2.f32 %v458_v2  ;;  %v476_v17 = vmul.f32 1.442695, %v475_v3  ;;  %v493_v19 = vsub.f32 %v983_v46, %v999_v52  ;;  %vm506_vm3 = vcmp.eq.s32.totalorder %v925_v13, 18 }
  0x4f   : > { %v388_v58 = vadd.f32 %v763_v49, %v379_v51  ;;  %v773_v16 = vpop.eup %772  ;;  %780 = vpow2.f32 %v467_v6  ;;  %v510_v10 = vsel %vm506_vm3, %v509_v14, %v501_v11  ;;  %v485_v12 = vmul.f32 1.442695, %v484_v9 }
  0x50   : > { %v775_v20 = vpop.eup %774  ;;  %v502_v22 = vsub.f32 %v990_v48, %v999_v52  ;;  %v517_v23 = vsel %vm511_vm2, %v510_v10, 0.0  ;;  %vm518_vm4 = vcmask 1041408   ;;  %v435_v46 = vsel %vm434_vm10, %v1065_v33, %v426_v38 }
  0x51   : > { %v397_v63 = vadd.f32 %v765_v56, %v388_v58  ;;  %v527_v26 = vsel %vm518_vm4, %v517_v23, 0.0  ;;  %782 = vpow2.f32 %v476_v17  ;;  %v494_v15 = vmul.f32 1.442695, %v493_v19 }
  0x52   : > { %v777_v27 = vpop.eup %776  ;;  %v528_v29 = vrot.slane %v527_v26, 4  ;;  %v444_v48 = vsel %vm443_vm11, %v1076_v40, %v435_v46  ;;  %784 = vpow2.f32 %v485_v12  ;;  %v503_v52 = vmul.f32 1.442695, %v502_v22 }
  0x53   : > { %v406_v5 = vadd.f32 %v767_v61, %v397_v63  ;;  %786 = vpow2.f32 %v494_v15  ;;  %v453_v18 = vsel %vm452_vm12, %v1088_v24, %v444_v48 }
  0x54   : > { %v779_v31 = vpop.eup %778  ;;  %v529_v34 = vadd.f32 %v528_v29, %v527_v26  ;;  %788 = vpow2.f32 %v503_v52  ;;  %v462_v40 = vsel %vm461_vm13, %v1101_v28, %v453_v18 }
  0x55   : > { %v415_v8 = vadd.f32 %v769_v36, %v406_v5  ;;  %v781_v35 = vpop.eup %780  ;;  %v471_v24 = vsel %vm470_vm14, %v1107_v59, %v462_v40 }
  0x56   : > { %v530_v33 = vrot.slane %v529_v34, 2  ;;  %v480_v55 = vsel %vm479_vm15, %v475_v3, %v471_v24 }
  0x57   : > { %v424_v42 = vadd.f32 %v771_v7, %v415_v8  ;;  %v783_v21 = vpop.eup %782  ;;  %v489_v28 = vsel %vm488_vm0, %v484_v9, %v480_v55 }
  0x58   : > { %v531_v41 = vadd.f32 %v530_v33, %v529_v34  ;;  %v785_v44 = vpop.eup %784  ;;  %v498_v57 = vsel %vm497_vm1, %v493_v19, %v489_v28 }
  0x59   : > { %v433_v25 = vadd.f32 %v773_v16, %v424_v42  ;;  %v787_v49 = vpop.eup %786  ;;  %v507_v59 = vsel %vm506_vm3, %v502_v22, %v498_v57 }
  0x5a   : > { %v532_v45 = vrot.slane %v531_v41, 1  ;;  %v789_v53 = vpop.eup %788 }
  0x5b   : > { %v442_v30 = vadd.f32 %v775_v20, %v433_v25 }
  0x5c   : > { %v533_v50 = vadd.f32 %v532_v45, %v531_v41 }
  0x5d   : > { %v451_v37 = vadd.f32 %v777_v27, %v442_v30 }
  0x5e   : > { %534 = vst [vmem:[%s283_s5] sm:$0x1] %v533_v50 }
  0x5f   : > { %v460_v39 = vadd.f32 %v779_v31, %v451_v37 }
  0x61   : > { %v469_v43 = vadd.f32 %v781_v35, %v460_v39 }
  0x63   : > { %v478_v47 = vadd.f32 %v783_v21, %v469_v43 }
  0x65   : > { %v487_v51 = vadd.f32 %v785_v44, %v478_v47 }
  0x67   : > { %v496_v54 = vadd.f32 %v787_v49, %v487_v51 }
  0x69   : > { %v505_v56 = vadd.f32 %v789_v53, %v496_v54 }
  0x6b   : > { %790 = vlog2.f32 %v505_v56 }
  0x71   : > { %v791_v58 = vpop.eup %790 }
  0x72   : > { %v513_v60 = vmul.f32 0.6931472, %v791_v58 }
  0x74   : > { %v514_v61 = vsub.f32 %v513_v60, %v507_v59 }
  0x76   : > { %v515_v62 = vmul.f32 %v514_v61, %v510_v10 }
  0x78   : > { %v516_v32 = vsel %vm511_vm2, %v515_v62, 0.0 }
  0x79   : > { %v519_v63 = vsel %vm518_vm4, %v516_v32, 0.0 }
  0x7a   : > { %v520_v0 = vrot.slane %v519_v63, 4 }
  0x7c   : > { %v521_v1 = vadd.f32 %v520_v0, %v519_v63 }
  0x7e   : > { %v522_v36 = vrot.slane %v521_v1, 2 }
  0x80   : > { %v523_v2 = vadd.f32 %v522_v36, %v521_v1 }
  0x82   : > { %v524_v3 = vrot.slane %v523_v2, 1 }
  0x84   : > { %v525_v4 = vadd.f32 %v524_v3, %v523_v2 }
  0x86   : > { %526 = vst [vmem:[%s277_s8] sm:$0x1] %v525_v4 }
  0x87 PF: > { %s16_s17 = sadd.s32 1, %s833_s17   ;;  %s1191_s15 = smov %s829_s16 }
  0x88   : > { %p13_p8 = scmp.ge.s32.totalorder %s16_s17, 4   ;;  %s1192_s16 = smov %s1194_s19 }
  0x8a   :  { %15 = sbr.rel (!%p13_p8) target bundleno = 2 (0x2), region = 100 }
  0x8f   :  { %576 = vsyncpa [#allocation3], 1 }
  0x90   :  { %578 = vsyncpa [#allocation3 + $0x1], 1 }

</bundles_post_ra>
